<compile_context>
chip_gen: v6e
topology: v6e:2x2x1
jax: 0.10.0
libtpu: 0.0.40
codegen_flags: <defaults>
</compile_context>

<pallas_src>
import functools

import jax
import jax.numpy as jnp
from jax import lax
from jax.experimental import pallas as pl
from jax.experimental.pallas import tpu as pltpu


def _resnet_kernel(x_ref, w1_ref, w2_ref, o_ref, *, width):
    # x_ref : (Nb, Cin,  H*W)  f32   channel-major activation block
    # w1_ref: (9, Cres, Cin)   bf16  3x3 weights, tap-major (t = dy*3 + dx)
    # w2_ref: (Cout, Cres)     bf16  1x1 weights
    # o_ref : (Nb, Cout, H*W)  f32   channel-major output block
    Nb, Cin, HW = x_ref.shape
    Cres = w1_ref.shape[1]
    W = width

    # Column index of every flattened spatial position (hoisted once, reused
    # by every image / tap).  Only dx != 1 taps need an explicit mask: the
    # vertically out-of-range reads land in the zero padding added below.
    col = lax.broadcasted_iota(jnp.int32, (1, HW), 1) % W
    keep_left = col >= 1            # valid when reading the left  neighbour
    keep_right = col <= W - 2       # valid when reading the right neighbour

    zpad = jnp.zeros((Cin, W + 1), jnp.bfloat16)        # hoisted (no re-bcast)
    w1_taps = [w1_ref[t] for t in range(9)]             # 9 x (Cres, Cin) bf16
    w2 = w2_ref[...]                                    # (Cout, Cres)    bf16

    for n in range(Nb):                                 # static, small loop
        x2 = x_ref[n]                                   # (Cin, H*W) f32
        rx = jnp.maximum(x2, 0.0).astype(jnp.bfloat16)  # ReLU(x), bf16

        # Zero-pad the flattened spatial axis by W+1 lanes on each side: any
        # vertically out-of-range tap read lands in the zero region, so only
        # horizontal wrap-around (dx != 1) needs the column mask.
        padded = jnp.concatenate([zpad, rx, zpad], axis=1)   # (Cin, HW+2W+2)

        acc = jnp.zeros((Cres, HW), jnp.float32)
        for t in range(9):
            dy, dx = t // 3, t % 3
            start = (W + 1) + (dy - 1) * W + (dx - 1)        # static offset
            tap = padded[:, start:start + HW]                # (Cin, H*W) bf16
            if dx == 0:
                tap = jnp.where(keep_left, tap, 0)
            elif dx == 2:
                tap = jnp.where(keep_right, tap, 0)
            acc = acc + jnp.dot(w1_taps[t], tap,
                                preferred_element_type=jnp.float32)

        h = jnp.maximum(acc, 0.0).astype(jnp.bfloat16)       # (Cres, H*W)
        y = jnp.dot(w2, h, preferred_element_type=jnp.float32)  # (Cout, H*W)

        # Residual add in f32; store is lane-dense (H*W on lanes), no
        # transpose needed -- the HBM result is already NCHW-flattened.
        o_ref[n] = (x2 + y).astype(o_ref.dtype)


@functools.partial(jax.jit, static_argnames=("block_n",))
def resnet_forward(x_nchw, w1_oihw, w2_oihw, *, block_n=1):
    """x_nchw: (N, Cin, H, W); w1: (Cres, Cin, 3, 3); w2: (Cout, Cres, 1, 1)."""
    N, Cin, H, W = x_nchw.shape
    Cres = w1_oihw.shape[0]
    Cout = w2_oihw.shape[0]
    assert Cout == Cin, "residual add requires num_hiddens == in_channels"
    assert w1_oihw.shape[2:] == (3, 3) and w2_oihw.shape[2:] == (1, 1)

    if N % block_n != 0:       # keep divisibility trivially satisfied
        block_n = 1

    # Channel-major views: free reshapes, no transposes of the activation.
    x = x_nchw.reshape(N, Cin, H * W)
    # (Cres, Cin, 3, 3) -> (3, 3, Cres, Cin) -> (9, Cres, Cin), bf16
    w1 = jnp.transpose(w1_oihw, (2, 3, 0, 1)).reshape(9, Cres, Cin)
    w1 = w1.astype(jnp.bfloat16)
    w2 = w2_oihw[:, :, 0, 0].astype(jnp.bfloat16)            # (Cout, Cres)

    grid = (N // block_n,)
    kernel = functools.partial(_resnet_kernel, width=W)

    out = pl.pallas_call(
        kernel,
        out_shape=jax.ShapeDtypeStruct((N, Cout, H * W), x.dtype),
        grid_spec=pltpu.PrefetchScalarGridSpec(
            num_scalar_prefetch=0,
            grid=grid,
            in_specs=[
                pl.BlockSpec((block_n, Cin, H * W), lambda n: (n, 0, 0)),
                # Constant index_maps: weights stay resident in VMEM.
                pl.BlockSpec((9, Cres, Cin), lambda n: (0, 0, 0)),
                pl.BlockSpec((Cout, Cres), lambda n: (0, 0)),
            ],
            out_specs=pl.BlockSpec((block_n, Cout, H * W),
                                   lambda n: (n, 0, 0)),
        ),
        compiler_params=pltpu.CompilerParams(
            dimension_semantics=("parallel",)),
    )(x, w1, w2)

    # (N, Cout, H*W) -> (N, Cout, H, W): free row-major reshape (already NCHW).
    return out.reshape(N, Cout, H, W)


def resnet_reference(x, w1, w2):
    """Pure-JAX f32 reference matching the PyTorch module (NCHW)."""
    dn = ("NCHW", "OIHW", "NCHW")
    r = jax.nn.relu(x)
    h = lax.conv_general_dilated(r, w1, (1, 1), ((1, 1), (1, 1)),
                                 dimension_numbers=dn)
    h = jax.nn.relu(h)
    y = lax.conv_general_dilated(h, w2, (1, 1), "VALID",
                                 dimension_numbers=dn)
    return x + y


if __name__ == "__main__":
    # Small shapes consistent with the module: in_channels == num_hiddens.
    N, H, W = 2, 16, 16
    in_channels = num_hiddens = 32
    num_residual_hiddens = 16

    key = jax.random.PRNGKey(0)
    kx, k1, k2 = jax.random.split(key, 3)

    x = jax.random.normal(kx, (N, in_channels, H, W), dtype=jnp.float32)
    # Deterministic synthetic weights (PyTorch OIHW conv layout).
    w1 = jax.random.normal(
        k1, (num_residual_hiddens, in_channels, 3, 3),
        dtype=jnp.float32) * (1.0 / jnp.sqrt(in_channels * 9.0))
    w2 = jax.random.normal(
        k2, (num_hiddens, num_residual_hiddens, 1, 1),
        dtype=jnp.float32) * (1.0 / jnp.sqrt(float(num_residual_hiddens)))

    out = resnet_forward(x, w1, w2)
    out = jax.block_until_ready(out)

    ref = jax.block_until_ready(resnet_reference(x, w1, w2))
    max_err = float(jnp.max(jnp.abs(out - ref)))
    assert out.shape == (N, in_channels, H, W)
    # Tolerance covers bf16 MXU inputs (f32 accumulation); observed drift is
    # far below this, real bugs (tap order / padding / masks) would be O(1).
    assert max_err < 5e-2, f"mismatch vs reference: {max_err}"

    print("KERNEL_OK")
</pallas_src>

<mosaic_0001>
module attributes {stable_mosaic.version = 11 : i64} {
  func.func @_resnet_kernel(%arg0: i32, %arg1: memref<1x32x256xf32, #tpu.memory_space<vmem>>, %arg2: memref<9x16x32xbf16, #tpu.memory_space<vmem>>, %arg3: memref<32x16xbf16, #tpu.memory_space<vmem>>, %arg4: memref<1x32x256xf32, #tpu.memory_space<vmem>>) attributes {dimension_semantics = [#tpu.dimension_semantics<parallel>], iteration_bounds = array<i64: 2>, scalar_prefetch = 0 : i64, scratch_operands = 0 : i64, tpu.core_type = #tpu.core_type<tc>, window_params = [{transform_indices = @transform_0, window_bounds = array<i64: 1, 32, 256>}, {pipeline_mode = #tpu.pipeline_mode<synchronous>, transform_indices = @transform_1, window_bounds = array<i64: 9, 16, 32>}, {pipeline_mode = #tpu.pipeline_mode<synchronous>, transform_indices = @transform_2, window_bounds = array<i64: 32, 16>}, {transform_indices = @transform_3, window_bounds = array<i64: 1, 32, 256>}]} {
    %0 = tpu.iota {dimensions = array<i32: 1>} : vector<1x256xi32>
    %c16_i32 = arith.constant 16 : i32
    %c0_i32 = arith.constant 0 : i32
    %1 = arith.cmpi eq, %c16_i32, %c0_i32 : i32
    %c1_i32 = arith.constant 1 : i32
    %2 = arith.select %1, %c1_i32, %c16_i32 : i32
    %3 = vector.broadcast %2 : i32 to vector<1x256xi32>
    %4 = arith.remsi %0, %3 : vector<1x256xi32>
    %c0_i32_0 = arith.constant 0 : i32
    %5 = vector.broadcast %c0_i32_0 : i32 to vector<1x256xi32>
    %6 = arith.cmpi ne, %4, %5 : vector<1x256xi32>
    %c0_i32_1 = arith.constant 0 : i32
    %7 = vector.broadcast %c0_i32_1 : i32 to vector<1x256xi32>
    %8 = arith.cmpi slt, %4, %7 : vector<1x256xi32>
    %c0_i32_2 = arith.constant 0 : i32
    %9 = arith.cmpi slt, %2, %c0_i32_2 : i32
    %10 = vector.broadcast %9 : i1 to vector<1x256xi1>
    %11 = vector.broadcast %10 : vector<1x256xi1> to vector<1x256xi1>
    %12 = arith.xori %8, %11 : vector<1x256xi1>
    %13 = arith.andi %12, %6 : vector<1x256xi1>
    %14 = vector.broadcast %2 : i32 to vector<1x256xi32>
    %15 = arith.addi %4, %14 : vector<1x256xi32>
    %16 = arith.select %13, %15, %4 : vector<1x256xi1>, vector<1x256xi32>
    %c1_i32_3 = arith.constant 1 : i32
    %17 = vector.broadcast %c1_i32_3 : i32 to vector<1x256xi32>
    %18 = arith.cmpi sge, %16, %17 : vector<1x256xi32>
    %c14_i32 = arith.constant 14 : i32
    %19 = vector.broadcast %c14_i32 : i32 to vector<1x256xi32>
    %20 = arith.cmpi sle, %16, %19 : vector<1x256xi32>
    %cst = arith.constant 0.000000e+00 : bf16
    %21 = vector.broadcast %cst : bf16 to vector<32x17xbf16>
    %c0 = arith.constant 0 : index
    %c0_4 = arith.constant 0 : index
    %c0_5 = arith.constant 0 : index
    %22 = vector.load %arg2[%c0, %c0_4, %c0_5] : memref<9x16x32xbf16, #tpu.memory_space<vmem>>, vector<1x16x32xbf16>
    %23 = vector.shape_cast %22 : vector<1x16x32xbf16> to vector<16x32xbf16>
    %c1 = arith.constant 1 : index
    %c0_6 = arith.constant 0 : index
    %c0_7 = arith.constant 0 : index
    %24 = vector.load %arg2[%c1, %c0_6, %c0_7] : memref<9x16x32xbf16, #tpu.memory_space<vmem>>, vector<1x16x32xbf16>
    %25 = vector.shape_cast %24 : vector<1x16x32xbf16> to vector<16x32xbf16>
    %c2 = arith.constant 2 : index
    %c0_8 = arith.constant 0 : index
    %c0_9 = arith.constant 0 : index
    %26 = vector.load %arg2[%c2, %c0_8, %c0_9] : memref<9x16x32xbf16, #tpu.memory_space<vmem>>, vector<1x16x32xbf16>
    %27 = vector.shape_cast %26 : vector<1x16x32xbf16> to vector<16x32xbf16>
    %c3 = arith.constant 3 : index
    %c0_10 = arith.constant 0 : index
    %c0_11 = arith.constant 0 : index
    %28 = vector.load %arg2[%c3, %c0_10, %c0_11] : memref<9x16x32xbf16, #tpu.memory_space<vmem>>, vector<1x16x32xbf16>
    %29 = vector.shape_cast %28 : vector<1x16x32xbf16> to vector<16x32xbf16>
    %c4 = arith.constant 4 : index
    %c0_12 = arith.constant 0 : index
    %c0_13 = arith.constant 0 : index
    %30 = vector.load %arg2[%c4, %c0_12, %c0_13] : memref<9x16x32xbf16, #tpu.memory_space<vmem>>, vector<1x16x32xbf16>
    %31 = vector.shape_cast %30 : vector<1x16x32xbf16> to vector<16x32xbf16>
    %c5 = arith.constant 5 : index
    %c0_14 = arith.constant 0 : index
    %c0_15 = arith.constant 0 : index
    %32 = vector.load %arg2[%c5, %c0_14, %c0_15] : memref<9x16x32xbf16, #tpu.memory_space<vmem>>, vector<1x16x32xbf16>
    %33 = vector.shape_cast %32 : vector<1x16x32xbf16> to vector<16x32xbf16>
    %c6 = arith.constant 6 : index
    %c0_16 = arith.constant 0 : index
    %c0_17 = arith.constant 0 : index
    %34 = vector.load %arg2[%c6, %c0_16, %c0_17] : memref<9x16x32xbf16, #tpu.memory_space<vmem>>, vector<1x16x32xbf16>
    %35 = vector.shape_cast %34 : vector<1x16x32xbf16> to vector<16x32xbf16>
    %c7 = arith.constant 7 : index
    %c0_18 = arith.constant 0 : index
    %c0_19 = arith.constant 0 : index
    %36 = vector.load %arg2[%c7, %c0_18, %c0_19] : memref<9x16x32xbf16, #tpu.memory_space<vmem>>, vector<1x16x32xbf16>
    %37 = vector.shape_cast %36 : vector<1x16x32xbf16> to vector<16x32xbf16>
    %c8 = arith.constant 8 : index
    %c0_20 = arith.constant 0 : index
    %c0_21 = arith.constant 0 : index
    %38 = vector.load %arg2[%c8, %c0_20, %c0_21] : memref<9x16x32xbf16, #tpu.memory_space<vmem>>, vector<1x16x32xbf16>
    %39 = vector.shape_cast %38 : vector<1x16x32xbf16> to vector<16x32xbf16>
    %c0_22 = arith.constant 0 : index
    %c0_23 = arith.constant 0 : index
    %40 = vector.load %arg3[%c0_22, %c0_23] : memref<32x16xbf16, #tpu.memory_space<vmem>>, vector<32x16xbf16>
    %c0_24 = arith.constant 0 : index
    %c0_25 = arith.constant 0 : index
    %c0_26 = arith.constant 0 : index
    %41 = vector.load %arg1[%c0_24, %c0_25, %c0_26] : memref<1x32x256xf32, #tpu.memory_space<vmem>>, vector<1x32x256xf32>
    %42 = vector.shape_cast %41 : vector<1x32x256xf32> to vector<32x256xf32>
    %cst_27 = arith.constant 0.000000e+00 : f32
    %43 = vector.broadcast %cst_27 : f32 to vector<32x256xf32>
    %44 = arith.maximumf %42, %43 : vector<32x256xf32>
    %45 = arith.truncf %44 : vector<32x256xf32> to vector<32x256xbf16>
    %46 = tpu.concatenate %21, %45, %21 in 1 : vector<32x17xbf16>, vector<32x256xbf16>, vector<32x17xbf16> -> vector<32x290xbf16>
    %cst_28 = arith.constant 0.000000e+00 : f32
    %47 = vector.broadcast %cst_28 : f32 to vector<16x256xf32>
    %48 = vector.extract_strided_slice %46 {offsets = [0, 0], sizes = [32, 256], strides = [1, 1]} : vector<32x290xbf16> to vector<32x256xbf16>
    %c0_i32_29 = arith.constant 0 : i32
    %49 = arith.sitofp %c0_i32_29 : i32 to bf16
    %50 = vector.shape_cast %18 : vector<1x256xi1> to vector<1x256xi1>
    %51 = vector.broadcast %50 : vector<1x256xi1> to vector<32x256xi1>
    %52 = vector.broadcast %49 : bf16 to vector<32x256xbf16>
    %53 = arith.select %51, %48, %52 : vector<32x256xi1>, vector<32x256xbf16>
    %cst_30 = arith.constant dense<0.000000e+00> : vector<16x256xf32>
    %54 = tpu.matmul %23, %53, %cst_30 {dimension_numbers = #tpu.dot_dimension_numbers<[1], [0], [0], [1], [0, 0, 1, 1], [], []>} : vector<16x32xbf16>, vector<32x256xbf16>, vector<16x256xf32> -> vector<16x256xf32>
    %55 = arith.addf %47, %54 : vector<16x256xf32>
    %56 = vector.extract_strided_slice %46 {offsets = [0, 1], sizes = [32, 256], strides = [1, 1]} : vector<32x290xbf16> to vector<32x256xbf16>
    %cst_31 = arith.constant dense<0.000000e+00> : vector<16x256xf32>
    %57 = tpu.matmul %25, %56, %cst_31 {dimension_numbers = #tpu.dot_dimension_numbers<[1], [0], [0], [1], [0, 0, 1, 1], [], []>} : vector<16x32xbf16>, vector<32x256xbf16>, vector<16x256xf32> -> vector<16x256xf32>
    %58 = arith.addf %55, %57 : vector<16x256xf32>
    %59 = vector.extract_strided_slice %46 {offsets = [0, 2], sizes = [32, 256], strides = [1, 1]} : vector<32x290xbf16> to vector<32x256xbf16>
    %c0_i32_32 = arith.constant 0 : i32
    %60 = arith.sitofp %c0_i32_32 : i32 to bf16
    %61 = vector.shape_cast %20 : vector<1x256xi1> to vector<1x256xi1>
    %62 = vector.broadcast %61 : vector<1x256xi1> to vector<32x256xi1>
    %63 = vector.broadcast %60 : bf16 to vector<32x256xbf16>
    %64 = arith.select %62, %59, %63 : vector<32x256xi1>, vector<32x256xbf16>
    %cst_33 = arith.constant dense<0.000000e+00> : vector<16x256xf32>
    %65 = tpu.matmul %27, %64, %cst_33 {dimension_numbers = #tpu.dot_dimension_numbers<[1], [0], [0], [1], [0, 0, 1, 1], [], []>} : vector<16x32xbf16>, vector<32x256xbf16>, vector<16x256xf32> -> vector<16x256xf32>
    %66 = arith.addf %58, %65 : vector<16x256xf32>
    %67 = vector.extract_strided_slice %46 {offsets = [0, 16], sizes = [32, 256], strides = [1, 1]} : vector<32x290xbf16> to vector<32x256xbf16>
    %c0_i32_34 = arith.constant 0 : i32
    %68 = arith.sitofp %c0_i32_34 : i32 to bf16
    %69 = vector.shape_cast %18 : vector<1x256xi1> to vector<1x256xi1>
    %70 = vector.broadcast %69 : vector<1x256xi1> to vector<32x256xi1>
    %71 = vector.broadcast %68 : bf16 to vector<32x256xbf16>
    %72 = arith.select %70, %67, %71 : vector<32x256xi1>, vector<32x256xbf16>
    %cst_35 = arith.constant dense<0.000000e+00> : vector<16x256xf32>
    %73 = tpu.matmul %29, %72, %cst_35 {dimension_numbers = #tpu.dot_dimension_numbers<[1], [0], [0], [1], [0, 0, 1, 1], [], []>} : vector<16x32xbf16>, vector<32x256xbf16>, vector<16x256xf32> -> vector<16x256xf32>
    %74 = arith.addf %66, %73 : vector<16x256xf32>
    %75 = vector.extract_strided_slice %46 {offsets = [0, 17], sizes = [32, 256], strides = [1, 1]} : vector<32x290xbf16> to vector<32x256xbf16>
    %cst_36 = arith.constant dense<0.000000e+00> : vector<16x256xf32>
    %76 = tpu.matmul %31, %75, %cst_36 {dimension_numbers = #tpu.dot_dimension_numbers<[1], [0], [0], [1], [0, 0, 1, 1], [], []>} : vector<16x32xbf16>, vector<32x256xbf16>, vector<16x256xf32> -> vector<16x256xf32>
    %77 = arith.addf %74, %76 : vector<16x256xf32>
    %78 = vector.extract_strided_slice %46 {offsets = [0, 18], sizes = [32, 256], strides = [1, 1]} : vector<32x290xbf16> to vector<32x256xbf16>
    %c0_i32_37 = arith.constant 0 : i32
    %79 = arith.sitofp %c0_i32_37 : i32 to bf16
    %80 = vector.shape_cast %20 : vector<1x256xi1> to vector<1x256xi1>
    %81 = vector.broadcast %80 : vector<1x256xi1> to vector<32x256xi1>
    %82 = vector.broadcast %79 : bf16 to vector<32x256xbf16>
    %83 = arith.select %81, %78, %82 : vector<32x256xi1>, vector<32x256xbf16>
    %cst_38 = arith.constant dense<0.000000e+00> : vector<16x256xf32>
    %84 = tpu.matmul %33, %83, %cst_38 {dimension_numbers = #tpu.dot_dimension_numbers<[1], [0], [0], [1], [0, 0, 1, 1], [], []>} : vector<16x32xbf16>, vector<32x256xbf16>, vector<16x256xf32> -> vector<16x256xf32>
    %85 = arith.addf %77, %84 : vector<16x256xf32>
    %86 = vector.extract_strided_slice %46 {offsets = [0, 32], sizes = [32, 256], strides = [1, 1]} : vector<32x290xbf16> to vector<32x256xbf16>
    %c0_i32_39 = arith.constant 0 : i32
    %87 = arith.sitofp %c0_i32_39 : i32 to bf16
    %88 = vector.shape_cast %18 : vector<1x256xi1> to vector<1x256xi1>
    %89 = vector.broadcast %88 : vector<1x256xi1> to vector<32x256xi1>
    %90 = vector.broadcast %87 : bf16 to vector<32x256xbf16>
    %91 = arith.select %89, %86, %90 : vector<32x256xi1>, vector<32x256xbf16>
    %cst_40 = arith.constant dense<0.000000e+00> : vector<16x256xf32>
    %92 = tpu.matmul %35, %91, %cst_40 {dimension_numbers = #tpu.dot_dimension_numbers<[1], [0], [0], [1], [0, 0, 1, 1], [], []>} : vector<16x32xbf16>, vector<32x256xbf16>, vector<16x256xf32> -> vector<16x256xf32>
    %93 = arith.addf %85, %92 : vector<16x256xf32>
    %94 = vector.extract_strided_slice %46 {offsets = [0, 33], sizes = [32, 256], strides = [1, 1]} : vector<32x290xbf16> to vector<32x256xbf16>
    %cst_41 = arith.constant dense<0.000000e+00> : vector<16x256xf32>
    %95 = tpu.matmul %37, %94, %cst_41 {dimension_numbers = #tpu.dot_dimension_numbers<[1], [0], [0], [1], [0, 0, 1, 1], [], []>} : vector<16x32xbf16>, vector<32x256xbf16>, vector<16x256xf32> -> vector<16x256xf32>
    %96 = arith.addf %93, %95 : vector<16x256xf32>
    %97 = vector.extract_strided_slice %46 {offsets = [0, 34], sizes = [32, 256], strides = [1, 1]} : vector<32x290xbf16> to vector<32x256xbf16>
    %c0_i32_42 = arith.constant 0 : i32
    %98 = arith.sitofp %c0_i32_42 : i32 to bf16
    %99 = vector.shape_cast %20 : vector<1x256xi1> to vector<1x256xi1>
    %100 = vector.broadcast %99 : vector<1x256xi1> to vector<32x256xi1>
    %101 = vector.broadcast %98 : bf16 to vector<32x256xbf16>
    %102 = arith.select %100, %97, %101 : vector<32x256xi1>, vector<32x256xbf16>
    %cst_43 = arith.constant dense<0.000000e+00> : vector<16x256xf32>
    %103 = tpu.matmul %39, %102, %cst_43 {dimension_numbers = #tpu.dot_dimension_numbers<[1], [0], [0], [1], [0, 0, 1, 1], [], []>} : vector<16x32xbf16>, vector<32x256xbf16>, vector<16x256xf32> -> vector<16x256xf32>
    %104 = arith.addf %96, %103 : vector<16x256xf32>
    %cst_44 = arith.constant 0.000000e+00 : f32
    %105 = vector.broadcast %cst_44 : f32 to vector<16x256xf32>
    %106 = arith.maximumf %104, %105 : vector<16x256xf32>
    %107 = arith.truncf %106 : vector<16x256xf32> to vector<16x256xbf16>
    %cst_45 = arith.constant dense<0.000000e+00> : vector<32x256xf32>
    %108 = tpu.matmul %40, %107, %cst_45 {dimension_numbers = #tpu.dot_dimension_numbers<[1], [0], [0], [1], [0, 0, 1, 1], [], []>} : vector<32x16xbf16>, vector<16x256xbf16>, vector<32x256xf32> -> vector<32x256xf32>
    %109 = arith.addf %42, %108 : vector<32x256xf32>
    %c0_46 = arith.constant 0 : index
    %c0_47 = arith.constant 0 : index
    %c0_48 = arith.constant 0 : index
    %110 = vector.load %arg4[%c0_46, %c0_47, %c0_48] : memref<1x32x256xf32, #tpu.memory_space<vmem>>, vector<1x32x256xf32>
    %111 = vector.shape_cast %110 : vector<1x32x256xf32> to vector<32x256xf32>
    %112 = vector.shape_cast %109 : vector<32x256xf32> to vector<1x32x256xf32>
    tpu.vector_store %arg4[%c0_46, %c0_47, %c0_48], %112 {strides = array<i32>} : memref<1x32x256xf32, #tpu.memory_space<vmem>>, vector<1x32x256xf32>,
    return
  }
  func.func @transform_0(%arg0: i32) -> (i32, i32, i32) {
    %c0_i32 = arith.constant 0 : i32
    %c0_i32_0 = arith.constant 0 : i32
    %c0_i32_1 = arith.constant 0 : i32
    return %arg0, %c0_i32, %c0_i32_0 : i32, i32, i32
  }
  func.func @transform_1(%arg0: i32) -> (i32, i32, i32) {
    %c0_i32 = arith.constant 0 : i32
    %c0_i32_0 = arith.constant 0 : i32
    %c0_i32_1 = arith.constant 0 : i32
    %c0_i32_2 = arith.constant 0 : i32
    return %c0_i32, %c0_i32_0, %c0_i32_1 : i32, i32, i32
  }
  func.func @transform_2(%arg0: i32) -> (i32, i32) {
    %c0_i32 = arith.constant 0 : i32
    %c0_i32_0 = arith.constant 0 : i32
    %c0_i32_1 = arith.constant 0 : i32
    return %c0_i32, %c0_i32_0 : i32, i32
  }
  func.func @transform_3(%arg0: i32) -> (i32, i32, i32) {
    %c0_i32 = arith.constant 0 : i32
    %c0_i32_0 = arith.constant 0 : i32
    %c0_i32_1 = arith.constant 0 : i32
    return %arg0, %c0_i32, %c0_i32_0 : i32, i32, i32
  }
}

</mosaic_0001>

<bundles_post_ra>
// kernel: resnet_forward.1
= control target key start
LH: loop header
LB: loop body
LE: loop exit
PB: predicated region body
PF: predicated region fallthrough
CT: control target
= control target key end

     0   :  { %s1362_s12 = smov 0   ;;  %s1671_s0 = inlined_call_operand.vmem [shape: f32[2,32,256], index: 0, kind: input, shape index: {}]   ;;  %s1672_s1 = inlined_call_operand.vmem [shape: bf16[9,16,32], index: 1, kind: input, shape index: {}]   ;;  %s1673_s2 = inlined_call_operand.vmem [shape: bf16[32,16], index: 2, kind: input, shape index: {}]   ;;  %s1674_s3 = inlined_call_operand.vmem [shape: f32[2,32,256], index: 3, kind: output, shape index: {}]  }
   0x1 LB: > { %s1232_s13 = sadd.s32 4294967295, %s1325_s12   ;;  %p1236_p0 = scmp.ge.s32.totalorder %s1325_s12, 1  ;;  %s1325_s12 = sphi %s1362_s12, %s13_s12  }
   0x2   : > { %p137_p1 = scmp.lt.s32.totalorder %s1325_s12, 3 }
   0x4   : > { %p138_p2 = pnand %p1236_p0, %p137_p1 }
   0x5   : > { %p161_p3 = scmp.lt.s32.totalorder (!%p138_p2), %s1232_s13, 1  ;;  %s1328_s18 = smov (!%p138_p2), 17  }
   0x6   : > { %141 = sbr.rel (%p138_p2) target bundleno = 771 (0x303), region = 32  ;;  %s1329_s19 = smov (!%p138_p2), 2  }
   0x7   : > { %s1330_s20 = smov (!%p138_p2), 16   ;;  %s1331_s21 = smov (!%p138_p2), 18  }
   0x8   : > { %s1332_s22 = smov (!%p138_p2), 32   ;;  %s1333_s23 = smov (!%p138_p2), 34  }
   0x9   : > { %s1334_s24 = smov (!%p138_p2), 127   ;;  %s1335_s25 = smov (!%p138_p2), 111  }
   0xa   : > { %s1336_s26 = smov (!%p138_p2), 95   ;;  %s1337_s27 = smov (!%p138_p2), 126  }
   0xb   : > { %v174_v0 = vlaneseq  ;;  %v1327_v1 = vmov 0   ;;  %s1682_s13 = smov (!%p161_p3, %s1232_s13), 1  ;;  %vm267_vm6 = vcmask 138240   ;;  %s1338_s28 = smov 112   ;;  %vm336_vm14 = vcmask 261120  }
   0xc   : > { %372 = vmatprep.mubr.bf16.mxu0 %v1327_v1  ;;  %423 = vmatprep.mubr.bf16.mxu1 %v1327_v1  ;;  %s1283_s14 = sshll.u32 %s1682_s13, 6  ;;  %s1339_s4 = smov 110  }
   0xd   : > { %v175_v2 = vand.u32 127, %v174_v0  ;;  %s165_s17 = scalar_lea.vmem %s1671_s0, %s1283_s14  ;;  %v293_v5 = vshrl.u32 %v174_v0, 7  ;;  %s1340_s5 = smov 96  }
   0xe   : > { %v1380_v6 = vld [vmem:[%s165_s17 + $0x20] sm:$0xff]  ;;  %v1382_v7 = vld [vmem:[%s165_s17 + $0x30] sm:$0xff]  ;;  %v1399_v16 = vld [vmem:[%s165_s17 + $0x28] sm:$0xff]  ;;  %s1341_s6 = smov 94  }
   0xf   : > { %v176_v3 = vadd.s32 128, %v175_v2  ;;  %v181_v4 = vand.u32 15, %v175_v2  ;;  %v1384_v8 = vld [vmem:[%s165_s17] sm:$0xff]  ;;  %v247_v12 = vmax.f32 %v1380_v6, 0.0  ;;  %v249_v13 = vmax.f32 %v1382_v7, 0.0  ;;  %v1396_v14 = vld [vmem:[%s165_s17 + $0x10] sm:$0xff] }
  0x10   : > { %v243_v15 = vmax.f32 %v1384_v8, 0.0  ;;  %v1401_v17 = vld [vmem:[%s165_s17 + $0x38] sm:$0xff]  ;;  %v245_v18 = vmax.f32 %v1396_v14, 0.0  ;;  %v248_v19 = vmax.f32 %v1399_v16, 0.0  ;;  %v1406_v21 = vld [vmem:[%s165_s17 + $0x8] sm:$0xff]  ;;  %v294_v29 = vsub.s32 0, %v293_v5 }
  0x11   : > { %v188_v9 = vand.u32 15, %v176_v3  ;;  %vm1386_vm0 = vcmp.le.s32.totalorder %v181_v4, 14  ;;  %vm1390_vm1 = vcmp.ge.s32.totalorder %v181_v4, 1  ;;  %v250_v20 = vmax.f32 %v1401_v17, 0.0  ;;  %v1408_v22 = vld [vmem:[%s165_s17 + $0x18] sm:$0xff]  ;;  %v1308_v2 = vld [vmem:[%s1672_s1] sm:$0xff]  }
  0x12   : > { %v253_v23 = vpack.c.bf16 %v249_v13, %v247_v12  ;;  %v244_v24 = vmax.f32 %v1406_v21, 0.0  ;;  %v246_v25 = vmax.f32 %v1408_v22, 0.0  ;;  %v251_v27 = vpack.c.bf16 %v245_v18, %v243_v15 }
  0x13   : > { %vm204_vm2 = vcmp.le.s32.totalorder %v188_v9, 14  ;;  %vm1414_vm4 = vcmp.ge.s32.totalorder %v188_v9, 1  ;;  %v254_v28 = vpack.c.bf16 %v250_v20, %v248_v19  ;;  %v298_v32 = vsub.s32 4, %v293_v5 }
  0x14   : > { %vm438_vm3 = vmpackc.low %vm204_vm2, %vm1386_vm0  ;;  %263 = vrot.lane.b32.xlu0 %v253_v23, %s1328_s18  ;;  %259 = vrot.lane.b32.xlu1 %v251_v27, %s1328_s18  ;;  %v252_v30 = vpack.c.bf16 %v246_v25, %v244_v24  ;;  %vm452_vm2 = vcmask 15360  }
  0x15   : > { %v439_v31 = vsel %vm438_vm3, 65537, %v1327_v1  ;;  %vm290_vm5 = vmpackc.low %vm1414_vm4, %vm1390_vm1  ;;  %vm549_vm4 = vcmask 130048  }
  0x16   : > { %v443_v33 = vrot.slane %v439_v31, %v294_v29  ;;  %v447_v34 = vrot.slane %v439_v31, %v298_v32  ;;  %v291_v35 = vsel %vm290_vm5, 65537, %v1327_v1 }
  0x17   : > { %v295_v36 = vrot.slane %v291_v35, %v294_v29  ;;  %v299_v37 = vrot.slane %v291_v35, %v298_v32 }
  0x18   : > { %265 = vrot.lane.b32.xlu0 %v254_v28, %s1328_s18  ;;  %261 = vrot.lane.b32.xlu1 %v252_v30, %s1328_s18 }
  0x19   : > { %vm301_vm7 = vcmp.ne.s16.totalorder %v299_v37, 0  ;;  %vm300_vm8 = vcmp.ne.s16.totalorder %v295_v36, 0 }
  0x1c   : > { %448 = vrot.lane.b32.xlu0 %v443_v33, %s1329_s19  ;;  %450 = vrot.lane.b32.xlu1 %v447_v34, %s1329_s19 }
  0x20   : > { %545 = vrot.lane.b32.xlu0 %v295_v36, %s1330_s20  ;;  %547 = vrot.lane.b32.xlu1 %v299_v37, %s1330_s20 }
  0x24   : > { %718 = vrot.lane.b32.xlu0 %v443_v33, %s1331_s21  ;;  %720 = vrot.lane.b32.xlu1 %v447_v34, %s1331_s21 }
  0x28   : > { %815 = vrot.lane.b32.xlu0 %v295_v36, %s1332_s22  ;;  %817 = vrot.lane.b32.xlu1 %v299_v37, %s1332_s22 }
  0x2c   : > { %988 = vrot.lane.b32.xlu0 %v443_v33, %s1333_s23  ;;  %990 = vrot.lane.b32.xlu1 %v447_v34, %s1333_s23 }
  0x86   : > { %v264_v38 = vpop.permute.xlu0 %263  ;;  %v260_v39 = vpop.permute.xlu1 %259 }
  0x87   : > { %v1425_v40 = vsel %vm267_vm6, 0, %v264_v38  ;;  %v1440_v47 = vsel %vm267_vm6, 0, %v260_v39 }
  0x88   : > { %v304_v46 = vsel %vm300_vm8, %v1425_v40, 0  ;;  %v302_v48 = vsel %vm300_vm8, %v1440_v47, 0  ;;  %vm722_vm8 = vcmask 146432  }
  0x8a   : > { %v266_v41 = vpop.permute.xlu0 %265  ;;  %v262_v44 = vpop.permute.xlu1 %261 }
  0x8b   : > { %v1428_v42 = vsel %vm267_vm6, %v264_v38, %v266_v41  ;;  %v1431_v43 = vsel %vm267_vm6, %v266_v41, 0  ;;  %v1434_v45 = vsel %vm267_vm6, %v260_v39, %v262_v44  ;;  %v1448_v49 = vsel %vm267_vm6, %v262_v44, 0 }
  0x8c   : > { %323 = vrot.lane.b32.xlu0 %v1428_v42, %s1334_s24  ;;  %1260 = vmatprep.subr.msk.bf16.mxu1 %vm301_vm7, %v1428_v42 }
  0x8d   : > { %325 = vrot.lane.b32.xlu1 %v1431_v43, %s1334_s24  ;;  %404 = vmatpush1.bf16.msra.mxu1 %v304_v46 }
  0x8e   : > { %1261 = vmatprep.subr.msk.bf16.mxu1 %vm301_vm7, %v1434_v45  ;;  %v449_v50 = vpop.permute.xlu0 %448  ;;  %v451_v51 = vpop.permute.xlu1 %450 }
  0x8f   : > { %vm454_vm9 = vcmp.ne.s16.totalorder %v449_v50, 0  ;;  %vm456_vm10 = vcmp.ne.s16.totalorder %v451_v51, 0  ;;  %v453_v18 = vsel %vm452_vm2, %v449_v50, %v451_v51  ;;  %vm756_vm2 = vcmask 900096  }
  0x90   : > { %321 = vrot.lane.b32.xlu0 %v1425_v40, %s1334_s24  ;;  %v460_v52 = vsel %vm454_vm9, %v1425_v40, 0  ;;  %v459_v55 = vsel %vm456_vm10, %v1448_v49, 0  ;;  %v462_v56 = vsel %vm456_vm10, %v1431_v43, 0  ;;  %v457_v59 = vsel %vm454_vm9, %v1440_v47, 0 }
  0x91   : > { %317 = vrot.lane.b32.xlu1 %v1434_v45, %s1334_s24  ;;  %406 = vmatpush1.bf16.msra.mxu1 %v302_v48  ;;  %vm455_vm5 = vcmp.ne.s16.totalorder %v453_v18, 0 }
  0x92   : > { %v546_v53 = vpop.permute.xlu0 %545  ;;  %v548_v54 = vpop.permute.xlu1 %547  ;;  %v461_v25 = vsel %vm455_vm5, %v1428_v42, 0  ;;  %v458_v26 = vsel %vm455_vm5, %v1434_v45, 0  ;;  %vm929_vm5 = vcmask 777216  }
  0x93   : > { %vm551_vm11 = vcmp.ne.s16.totalorder %v546_v53, 0  ;;  %vm553_vm12 = vcmp.ne.s16.totalorder %v548_v54, 0  ;;  %v550_v23 = vsel %vm549_vm4, %v546_v53, %v548_v54 }
  0x94   : > { %319 = vrot.lane.b32.xlu0 %v1448_v49, %s1334_s24  ;;  %v557_v58 = vsel %vm551_vm11, %v1425_v40, 0  ;;  %v554_v61 = vsel %vm551_vm11, %v1440_v47, 0  ;;  %v559_v62 = vsel %vm553_vm12, %v1431_v43, 0  ;;  %v556_v3 = vsel %vm553_vm12, %v1448_v49, 0  ;;  %1262 = vmatmul.mubr.msk.bf16.vlgmr.msra.gmra.mxu1 %vm336_vm14, %v1308_v2 }
  0x95   : > { %315 = vrot.lane.b32.xlu1 %v1440_v47, %s1334_s24  ;;  %627 = vmatprep.mubr.bf16.mxu1 %v1327_v1  ;;  %vm552_vm6 = vcmp.ne.s16.totalorder %v550_v23, 0  ;;  %vm992_vm11 = vcmask 277504  }
  0x96   : > { %v1471_v57 = vpop.permute.xlu1 %720  ;;  %v719_v60 = vpop.permute.xlu0 %718  ;;  %v558_v28 = vsel %vm552_vm6, %v1428_v42, 0  ;;  %v555_v31 = vsel %vm552_vm6, %v1434_v45, 0  ;;  %vm1026_vm6 = vcmask 769024  }
  0x97   : > { %vm724_vm13 = vcmp.ne.s16.totalorder %v719_v60, 0  ;;  %vm726_vm0 = vcmp.ne.s16.totalorder %v1471_v57, 0  ;;  %v723_v30 = vsel %vm722_vm8, %v719_v60, %v1471_v57 }
  0x98   : > { %657 = vrot.lane.b32.xlu0 %v1431_v43, %s1335_s25  ;;  %v730_v0 = vsel %vm724_vm13, %v1425_v40, 0  ;;  %v732_v9 = vsel %vm726_vm0, %v1431_v43, 0  ;;  %v727_v10 = vsel %vm724_vm13, %v1440_v47, 0  ;;  %v729_v15 = vsel %vm726_vm0, %v1448_v49, 0 }
  0x99   : > { %655 = vrot.lane.b32.xlu1 %v1428_v42, %s1335_s25  ;;  %vm725_vm10 = vcmp.ne.s16.totalorder %v723_v30, 0  ;;  %vm327_vm13 = vcmask 1039360   ;;  %vm583_vm0 = vcmask 916480  }
  0x9a   : > { %v818_v63 = vpop.permute.xlu1 %817  ;;  %v816_v4 = vpop.permute.xlu0 %815  ;;  %v731_v33 = vsel %vm725_vm10, %v1428_v42, 0  ;;  %v728_v35 = vsel %vm725_vm10, %v1434_v45, 0 }
  0x9b   : > { %vm823_vm15 = vcmp.ne.s16.totalorder %v818_v63, 0  ;;  %vm821_vm1 = vcmp.ne.s16.totalorder %v816_v4, 0  ;;  %v820_v27 = vsel %vm336_vm14, %v816_v4, %v818_v63 }
  0x9c   : > { %651 = vrot.lane.b32.xlu0 %v1448_v49, %s1335_s25  ;;  %v829_v5 = vsel %vm823_vm15, %v1431_v43, 0  ;;  %v827_v11 = vsel %vm821_vm1, %v1425_v40, 0  ;;  %v826_v13 = vsel %vm823_vm15, %v1448_v49, 0  ;;  %v824_v20 = vsel %vm821_vm1, %v1440_v47, 0 }
  0x9d   : > { %653 = vrot.lane.b32.xlu1 %v1425_v40, %s1335_s25  ;;  %vm822_vm9 = vcmp.ne.s16.totalorder %v820_v27, 0  ;;  %vm486_vm15 = vcmask 1031168   ;;  %vm659_vm1 = vcmask 908288  }
  0x9e   : > { %v991_v12 = vpop.permute.xlu1 %990  ;;  %v989_v24 = vpop.permute.xlu0 %988  ;;  %v828_v32 = vsel %vm822_vm9, %v1428_v42, 0  ;;  %v825_v36 = vsel %vm822_vm9, %v1434_v45, 0 }
  0x9f   : > { %vm996_vm3 = vcmp.ne.s16.totalorder %v991_v12, 0  ;;  %vm994_vm7 = vcmp.ne.s16.totalorder %v989_v24, 0  ;;  %v993_v34 = vsel %vm992_vm11, %v989_v24, %v991_v12 }
  0xa0   : > { %925 = vrot.lane.b32.xlu0 %v1428_v42, %s1336_s26  ;;  %v1002_v19 = vsel %vm996_vm3, %v1431_v43, 0  ;;  %v1000_v29 = vsel %vm994_vm7, %v1425_v40, 0  ;;  %vm995_vm12 = vcmp.ne.s16.totalorder %v993_v34, 0  ;;  %v999_v39 = vsel %vm996_vm3, %v1448_v49, 0 }
  0xa1   : > { %649 = vrot.lane.b32.xlu1 %v1434_v45, %s1335_s25  ;;  %v1001_v37 = vsel %vm995_vm12, %v1428_v42, 0  ;;  %v998_v38 = vsel %vm995_vm12, %v1434_v45, 0  ;;  %vm853_vm3 = vcmask 785408  }
  0xa4   : > { %923 = vrot.lane.b32.xlu0 %v1425_v40, %s1336_s26  ;;  %v997_v40 = vsel %vm994_vm7, %v1440_v47, 0 }
  0xa5   : > { %647 = vrot.lane.b32.xlu1 %v1440_v47, %s1335_s25 }
  0xa8   : > { %480 = vrot.lane.b32.xlu0 %v460_v52, %s1337_s27 }
  0xa9   : > { %927 = vrot.lane.b32.xlu1 %v1431_v43, %s1336_s26 }
  0xac   : > { %478 = vrot.lane.b32.xlu0 %v459_v55, %s1337_s27 }
  0xad   : > { %484 = vrot.lane.b32.xlu1 %v462_v56, %s1337_s27 }
  0xb0   : > { %577 = vrot.lane.b32.xlu0 %v557_v58, %s1338_s28 }
  0xb1   : > { %474 = vrot.lane.b32.xlu1 %v457_v59, %s1337_s27 }
  0xb4   : > { %571 = vrot.lane.b32.xlu0 %v554_v61, %s1338_s28 }
  0xb5   : > { %581 = vrot.lane.b32.xlu1 %v559_v62, %s1338_s28 }
  0xb8   : > { %750 = vrot.lane.b32.xlu0 %v730_v0, %s1339_s4 }
  0xb9   : > { %575 = vrot.lane.b32.xlu1 %v556_v3, %s1338_s28 }
  0xbc   : > { %851 = vrot.lane.b32.xlu0 %v829_v5, %s1340_s5 }
  0xbd   : > { %754 = vrot.lane.b32.xlu1 %v732_v9, %s1339_s4 }
  0xc0   : > { %744 = vrot.lane.b32.xlu0 %v727_v10, %s1339_s4 }
  0xc1   : > { %847 = vrot.lane.b32.xlu1 %v827_v11, %s1340_s5 }
  0xc4   : > { %845 = vrot.lane.b32.xlu0 %v826_v13, %s1340_s5 }
  0xc5   : > { %748 = vrot.lane.b32.xlu1 %v729_v15, %s1339_s4 }
  0xc8   : > { %1024 = vrot.lane.b32.xlu0 %v1002_v19, %s1341_s6 }
  0xc9   : > { %841 = vrot.lane.b32.xlu1 %v824_v20, %s1340_s5 }
  0xcc   : > { %482 = vrot.lane.b32.xlu0 %v461_v25, %s1337_s27 }
  0xcd   : > { %476 = vrot.lane.b32.xlu1 %v458_v26, %s1337_s27 }
  0xd0   : > { %579 = vrot.lane.b32.xlu0 %v558_v28, %s1338_s28 }
  0xd1   : > { %1020 = vrot.lane.b32.xlu1 %v1000_v29, %s1341_s6 }
  0xd4   : > { %573 = vrot.lane.b32.xlu0 %v555_v31, %s1338_s28 }
  0xd5   : > { %849 = vrot.lane.b32.xlu1 %v828_v32, %s1340_s5 }
  0xd8   : > { %752 = vrot.lane.b32.xlu0 %v731_v33, %s1339_s4  ;;  %v1310_v33 = vld [vmem:[%s1672_s1 + $0x10] sm:$0xff]  }
  0xd9   : > { %921 = vrot.lane.b32.xlu1 %v1448_v49, %s1336_s26 }
  0xdc   : > { %746 = vrot.lane.b32.xlu0 %v728_v35, %s1339_s4 }
  0xdd   : > { %843 = vrot.lane.b32.xlu1 %v825_v36, %s1340_s5  ;;  %s170_s5 = scalar_lea.vmem %s1674_s3, %s1283_s14 }
  0xe0   : > { %919 = vrot.lane.b32.xlu0 %v1434_v45, %s1336_s26 }
  0xe1   : > { %1022 = vrot.lane.b32.xlu1 %v1001_v37, %s1341_s6 }
  0xe4   : > { %917 = vrot.lane.b32.xlu0 %v1440_v47, %s1336_s26  ;;  %v1309_v47 = vld [vmem:[%s1672_s1 + $0x8] sm:$0xff]  }
  0xe5   : > { %1016 = vrot.lane.b32.xlu1 %v998_v38, %s1341_s6 }
  0xe8   : > { %1018 = vrot.lane.b32.xlu0 %v999_v39, %s1341_s6 }
  0xe9   : > { %1014 = vrot.lane.b32.xlu1 %v997_v40, %s1341_s6  ;;  %v1311_v40 = vld [vmem:[%s1672_s1 + $0x18] sm:$0xff]  }
  0xfe   : > { %v324_v41 = vpop.permute.xlu0 %323 }
  0xff   : > { %v326_v42 = vpop.permute.xlu1 %325 }
 0x100   : > { %v331_v43 = vsel %vm327_vm13, %v324_v41, %v326_v42 }
 0x101   : > { %352 = vmatprep.subr.bf16.mxu0 %v331_v43 }
 0x102   : > { %v322_v44 = vpop.permute.xlu0 %321 }
 0x103   : > { %v318_v46 = vpop.permute.xlu1 %317  ;;  %v330_v45 = vsel %vm327_vm13, %v322_v44, %v324_v41 }
 0x104   : > { %353 = vmatpush1.bf16.msra.mxu0 %v330_v45 }
 0x106   : > { %v320_v48 = vpop.permute.xlu0 %319 }
 0x107   : > { %v316_v50 = vpop.permute.xlu1 %315  ;;  %v329_v51 = vsel %vm327_vm13, %v318_v46, %v320_v48  ;;  %v1312_v48 = vld [vmem:[%s1672_s1 + $0x20] sm:$0xff]  }
 0x108   : > { %354 = vmatprep.subr.bf16.mxu0 %v329_v51  ;;  %v328_v49 = vsel %vm327_vm13, %v316_v50, %v318_v46 }
 0x109   : > { %355 = vmatpush1.bf16.msra.mxu0 %v328_v49 }
 0x10a   : > { %v658_v52 = vpop.permute.xlu0 %657 }
 0x10b   : > { %v656_v53 = vpop.permute.xlu1 %655 }
 0x10c   : > { %1258 = vmatmul.mubr.msk.bf16.vlgmr.msra.gmra.mxu0 %vm336_vm14, %v1309_v47  ;;  %v663_v34 = vsel %vm659_vm1, %v656_v53, %v658_v52 }
 0x10d   : > { %530 = vmatprep.mubr.bf16.mxu0 %v1327_v1 }
 0x10e   : > { %v652_v54 = vpop.permute.xlu0 %651 }
 0x10f   : > { %v654_v55 = vpop.permute.xlu1 %653 }
 0x110   : > { %v662_v39 = vsel %vm659_vm1, %v654_v55, %v656_v53 }
 0x112   : > { %v1562_v56 = vpop.permute.xlu0 %925 }
 0x113   : > { %v1564_v57 = vpop.permute.xlu1 %649 }
 0x114   : > { %v661_v41 = vsel %vm659_vm1, %v1564_v57, %v652_v54  ;;  %v1313_v54 = vld [vmem:[%s1672_s1 + $0x28] sm:$0xff]  }
 0x116   : > { %v1566_v58 = vpop.permute.xlu0 %923 }
 0x117   : > { %v648_v59 = vpop.permute.xlu1 %647 }
 0x118   : > { %v660_v45 = vsel %vm659_vm1, %v648_v59, %v1564_v57 }
 0x11a   : > { %v481_v60 = vpop.permute.xlu0 %480 }
 0x11b   : > { %v1568_v61 = vpop.permute.xlu1 %927 }
 0x11c   : > { %v933_v57 = vsel %vm929_vm5, %v1562_v56, %v1568_v61  ;;  %v1314_v61 = vld [vmem:[%s1672_s1 + $0x30] sm:$0xff]  }
 0x11e   : > { %v479_v62 = vpop.permute.xlu0 %478 }
 0x11f   : > { %v485_v63 = vpop.permute.xlu1 %484 }
 0x122   : > { %v578_v0 = vpop.permute.xlu0 %577 }
 0x123   : > { %v475_v2 = vpop.permute.xlu1 %474 }
 0x126   : > { %v572_v3 = vpop.permute.xlu0 %571 }
 0x127   : > { %v582_v4 = vpop.permute.xlu1 %581 }
 0x12a   : > { %v751_v5 = vpop.permute.xlu0 %750 }
 0x12b   : > { %v576_v9 = vpop.permute.xlu1 %575 }
 0x12e   : > { %v852_v10 = vpop.permute.xlu0 %851 }
 0x12f   : > { %v755_v11 = vpop.permute.xlu1 %754 }
 0x132   : > { %v745_v12 = vpop.permute.xlu0 %744 }
 0x133   : > { %v848_v13 = vpop.permute.xlu1 %847 }
 0x136   : > { %v1570_v15 = vpop.permute.xlu0 %845 }
 0x137   : > { %v749_v18 = vpop.permute.xlu1 %748 }
 0x13a   : > { %v1572_v19 = vpop.permute.xlu0 %1024 }
 0x13b   : > { %v1574_v20 = vpop.permute.xlu1 %841 }
 0x13e   : > { %v483_v23 = vpop.permute.xlu0 %482 }
 0x13f   : > { %v489_v24 = vsel %vm486_vm15, %v481_v60, %v483_v23  ;;  %v477_v25 = vpop.permute.xlu1 %476  ;;  %v490_v26 = vsel %vm486_vm15, %v483_v23, %v485_v63 }
 0x140   : > { %510 = vmatprep.subr.bf16.mxu0 %v490_v26  ;;  %v488_v27 = vsel %vm486_vm15, %v477_v25, %v479_v62  ;;  %v487_v32 = vsel %vm486_vm15, %v475_v2, %v477_v25  ;;  %v932_v62 = vsel %vm929_vm5, %v1566_v58, %v1562_v56 }
 0x141   : > { %511 = vmatpush1.bf16.msra.mxu0 %v489_v24 }
 0x142   : > { %v580_v28 = vpop.permute.xlu0 %579  ;;  %512 = vmatprep.subr.bf16.mxu0 %v488_v27 }
 0x143   : > { %v586_v29 = vsel %vm583_vm0, %v578_v0, %v580_v28  ;;  %v1577_v30 = vpop.permute.xlu1 %1020  ;;  %v587_v31 = vsel %vm583_vm0, %v580_v28, %v582_v4 }
 0x144   : > { %607 = vmatprep.subr.bf16.mxu1 %v587_v31 }
 0x145   : > { %513 = vmatpush1.bf16.msra.mxu0 %v487_v32  ;;  %608 = vmatpush1.bf16.msra.mxu1 %v586_v29 }
 0x146   : > { %v574_v35 = vpop.permute.xlu0 %573  ;;  %683 = vmatprep.subr.bf16.mxu0 %v663_v34 }
 0x147   : > { %v584_v36 = vsel %vm583_vm0, %v572_v3, %v574_v35  ;;  %v850_v37 = vpop.permute.xlu1 %849  ;;  %v585_v38 = vsel %vm583_vm0, %v574_v35, %v576_v9 }
 0x148   : > { %1264 = vmatmul.mubr.msk.bf16.vlgmr.msra.gmra.mxu0 %vm336_vm14, %v1310_v33  ;;  %609 = vmatprep.subr.bf16.mxu1 %v585_v38  ;;  %v857_v50 = vsel %vm853_vm3, %v850_v37, %v852_v10  ;;  %v856_v53 = vsel %vm853_vm3, %v848_v13, %v850_v37  ;;  %v1316_v13 = vld [vmem:[%s1672_s1 + $0x40] sm:$0xff]  }
 0x149   : > { %610 = vmatpush1.bf16.msra.mxu1 %v584_v36  ;;  %684 = vmatpush1.bf16.msra.mxu0 %v662_v39 }
 0x14a   : > { %v753_v42 = vpop.permute.xlu0 %752  ;;  %685 = vmatprep.subr.bf16.mxu0 %v661_v41  ;;  %703 = vmatprep.mubr.bf16.mxu0 %v1327_v1 }
 0x14b   : > { %v759_v43 = vsel %vm756_vm2, %v751_v5, %v753_v42  ;;  %v922_v44 = vpop.permute.xlu1 %921  ;;  %v760_v46 = vsel %vm756_vm2, %v753_v42, %v755_v11  ;;  %v1315_v5 = vld [vmem:[%s1672_s1 + $0x38] sm:$0xff]  }
 0x14c   : > { %1266 = vmatmul.mubr.msk.bf16.vlgmr.msra.gmra.mxu1 %vm336_vm14, %v1311_v40  ;;  %780 = vmatprep.subr.bf16.mxu1 %v760_v46 }
 0x14d   : > { %686 = vmatpush1.bf16.msra.mxu0 %v660_v45  ;;  %781 = vmatpush1.bf16.msra.mxu1 %v759_v43 }
 0x14e   : > { %v747_v51 = vpop.permute.xlu0 %746  ;;  %877 = vmatprep.subr.bf16.mxu0 %v857_v50  ;;  %800 = vmatprep.mubr.bf16.mxu1 %v1327_v1 }
 0x14f   : > { %v757_v49 = vsel %vm756_vm2, %v745_v12, %v747_v51  ;;  %v844_v47 = vpop.permute.xlu1 %843  ;;  %v758_v52 = vsel %vm756_vm2, %v747_v51, %v749_v18 }
 0x150   : > { %1268 = vmatmul.mubr.msk.bf16.vlgmr.msra.gmra.mxu0 %vm336_vm14, %v1312_v48  ;;  %782 = vmatprep.subr.bf16.mxu1 %v758_v52  ;;  %v855_v55 = vsel %vm853_vm3, %v844_v47, %v1570_v15  ;;  %v854_v63 = vsel %vm853_vm3, %v1574_v20, %v844_v47 }
 0x151   : > { %783 = vmatpush1.bf16.msra.mxu1 %v757_v49  ;;  %878 = vmatpush1.bf16.msra.mxu0 %v856_v53 }
 0x152   : > { %v920_v59 = vpop.permute.xlu0 %919  ;;  %879 = vmatprep.subr.bf16.mxu0 %v855_v55  ;;  %953 = vmatprep.subr.bf16.mxu1 %v933_v57 }
 0x153   : > { %v1023_v60 = vpop.permute.xlu1 %1022  ;;  %897 = vmatprep.mubr.bf16.mxu0 %v1327_v1  ;;  %v931_v0 = vsel %vm929_vm5, %v920_v59, %v922_v44 }
 0x154   : > { %1270 = vmatmul.mubr.msk.bf16.vlgmr.msra.gmra.mxu1 %vm336_vm14, %v1313_v54  ;;  %v1030_v2 = vsel %vm1026_vm6, %v1023_v60, %v1572_v19  ;;  %v1029_v4 = vsel %vm1026_vm6, %v1577_v30, %v1023_v60  ;;  %v425_v18 = vpop.f32.mrf.mxu1 }
 0x155   : > { %880 = vmatpush1.bf16.msra.mxu0 %v854_v63  ;;  %954 = vmatpush1.bf16.msra.mxu1 %v932_v62 }
 0x156   : > { %v918_v3 = vpop.permute.xlu0 %917  ;;  %955 = vmatprep.subr.bf16.mxu1 %v931_v0  ;;  %1050 = vmatprep.subr.bf16.mxu0 %v1030_v2  ;;  %v427_v20 = vpop.f32.mrf.mxu1 }
 0x157   : > { %v930_v56 = vsel %vm929_vm5, %v918_v3, %v920_v59  ;;  %v1017_v58 = vpop.permute.xlu1 %1016  ;;  %973 = vmatprep.mubr.bf16.mxu1 %v1327_v1 }
 0x158   : > { %1272 = vmatmul.mubr.msk.bf16.vlgmr.msra.gmra.mxu0 %vm336_vm14, %v1314_v61  ;;  %v429_v24 = vpop.f32.mrf.mxu1 }
 0x159   : > { %956 = vmatpush1.bf16.msra.mxu1 %v930_v56  ;;  %1051 = vmatpush1.bf16.msra.mxu0 %v1029_v4 }
 0x15a   : > { %v1019_v9 = vpop.permute.xlu0 %1018  ;;  %1070 = vmatprep.mubr.bf16.mxu0 %v1327_v1  ;;  %v431_v27 = vpop.f32.mrf.mxu1 }
 0x15b   : > { %v1015_v10 = vpop.permute.xlu1 %1014  ;;  %v1028_v11 = vsel %vm1026_vm6, %v1017_v58, %v1019_v9 }
 0x15c   : > { %v1027_v12 = vsel %vm1026_vm6, %v1015_v10, %v1017_v58  ;;  %1274 = vmatmul.mubr.msk.bf16.vlgmr.msra.gmra.mxu1 %vm336_vm14, %v1315_v5  ;;  %1052 = vmatprep.subr.bf16.mxu0 %v1028_v11 }
 0x15d   : > { %1053 = vmatpush1.bf16.msra.mxu0 %v1027_v12  ;;  %1140 = vmatprep.mubr.bf16.mxu1 %v1327_v1 }
 0x160   : > { %1276 = vmatmul.mubr.msk.bf16.vlgmr.msra.gmra.mxu0 %vm336_vm14, %v1316_v13 }
 0x1cc   : > { %v374_v15 = vpop.f32.mrf.mxu0 }
 0x1cd   : > { %v426_v43 = vadd.f32 %v425_v18, %v374_v15 }
 0x1ce   : > { %v376_v19 = vpop.f32.mrf.mxu0 }
 0x1cf   : > { %v428_v41 = vadd.f32 %v427_v20, %v376_v19 }
 0x1d0   : > { %v378_v23 = vpop.f32.mrf.mxu0 }
 0x1d1   : > { %v430_v42 = vadd.f32 %v429_v24, %v378_v23 }
 0x1d2   : > { %v380_v25 = vpop.f32.mrf.mxu0 }
 0x1d3   : > { %v432_v45 = vadd.f32 %v431_v27, %v380_v25 }
 0x208   : > { %v532_v26 = vpop.f32.mrf.mxu0 }
 0x209   : > { %v541_v51 = vadd.f32 %v532_v26, %v426_v43 }
 0x20a   : > { %v534_v28 = vpop.f32.mrf.mxu0 }
 0x20b   : > { %v542_v48 = vadd.f32 %v534_v28, %v428_v41 }
 0x20c   : > { %v536_v29 = vpop.f32.mrf.mxu0  ;;  %v629_v30 = vpop.f32.mrf.mxu1 }
 0x20d   : > { %v543_v50 = vadd.f32 %v536_v29, %v430_v42  ;;  %v638_v55 = vadd.f32 %v629_v30, %v541_v51 }
 0x20e   : > { %v538_v31 = vpop.f32.mrf.mxu0  ;;  %v631_v32 = vpop.f32.mrf.mxu1 }
 0x20f   : > { %v544_v52 = vadd.f32 %v538_v31, %v432_v45  ;;  %v639_v53 = vadd.f32 %v631_v32, %v542_v48 }
 0x210   : > { %v633_v33 = vpop.f32.mrf.mxu1  ;;  %v705_v34 = vpop.f32.mrf.mxu0 }
 0x211   : > { %v640_v54 = vadd.f32 %v633_v33, %v543_v50  ;;  %v714_v61 = vadd.f32 %v705_v34, %v638_v55 }
 0x212   : > { %v635_v35 = vpop.f32.mrf.mxu1  ;;  %v707_v36 = vpop.f32.mrf.mxu0 }
 0x213   : > { %v641_v60 = vadd.f32 %v635_v35, %v544_v52  ;;  %v715_v62 = vadd.f32 %v707_v36, %v639_v53 }
 0x214   : > { %v709_v37 = vpop.f32.mrf.mxu0  ;;  %v802_v38 = vpop.f32.mrf.mxu1 }
 0x215   : > { %v716_v63 = vadd.f32 %v709_v37, %v640_v54  ;;  %v811_v4 = vadd.f32 %v802_v38, %v714_v61  ;;  %v1317_v38 = vld [vmem:[%s1673_s2] sm:$0xff]  }
 0x216   : > { %v711_v39 = vpop.f32.mrf.mxu0  ;;  %v804_v40 = vpop.f32.mrf.mxu1 }
 0x217   : > { %v717_v3 = vadd.f32 %v711_v39, %v641_v60  ;;  %v812_v56 = vadd.f32 %v804_v40, %v715_v62  ;;  %v1318_v39 = vld [vmem:[%s1673_s2 + $0x8] sm:$0xff]  }
 0x218   : > { %v806_v44 = vpop.f32.mrf.mxu1  ;;  %v899_v46 = vpop.f32.mrf.mxu0 }
 0x219   : > { %v813_v58 = vadd.f32 %v806_v44, %v716_v63  ;;  %v908_v13 = vadd.f32 %v899_v46, %v811_v4 }
 0x21a   : > { %v808_v49 = vpop.f32.mrf.mxu1  ;;  %v901_v47 = vpop.f32.mrf.mxu0 }
 0x21b   : > { %v814_v10 = vadd.f32 %v808_v49, %v717_v3  ;;  %v909_v11 = vadd.f32 %v901_v47, %v812_v56 }
 0x21c   : > { %v903_v57 = vpop.f32.mrf.mxu0  ;;  %v975_v59 = vpop.f32.mrf.mxu1 }
 0x21d   : > { %v910_v12 = vadd.f32 %v903_v57, %v813_v58  ;;  %v984_v24 = vadd.f32 %v975_v59, %v908_v13 }
 0x21e   : > { %v905_v0 = vpop.f32.mrf.mxu0  ;;  %v977_v2 = vpop.f32.mrf.mxu1 }
 0x21f   : > { %v911_v19 = vadd.f32 %v905_v0, %v814_v10  ;;  %v985_v20 = vadd.f32 %v977_v2, %v909_v11 }
 0x220   : > { %v979_v5 = vpop.f32.mrf.mxu1  ;;  %v1072_v9 = vpop.f32.mrf.mxu0 }
 0x221   : > { %v986_v23 = vadd.f32 %v979_v5, %v910_v12  ;;  %v1081_v29 = vadd.f32 %v1072_v9, %v984_v24 }
 0x222   : > { %v981_v15 = vpop.f32.mrf.mxu1  ;;  %v1074_v18 = vpop.f32.mrf.mxu0 }
 0x223   : > { %v987_v26 = vadd.f32 %v981_v15, %v911_v19  ;;  %v1082_v27 = vadd.f32 %v1074_v18, %v985_v20  ;;  %v1085_v35 = vmax.f32 %v1081_v29, 0.0 }
 0x224   : > { %v1076_v25 = vpop.f32.mrf.mxu0 }
 0x225   : > { %v1083_v28 = vadd.f32 %v1076_v25, %v986_v23  ;;  %v1086_v33 = vmax.f32 %v1082_v27, 0.0 }
 0x226   : > { %v1078_v30 = vpop.f32.mrf.mxu0 }
 0x227   : > { %v1084_v31 = vadd.f32 %v1078_v30, %v987_v26  ;;  %v1087_v32 = vmax.f32 %v1083_v28, 0.0 }
 0x229   : > { %v1088_v34 = vmax.f32 %v1084_v31, 0.0  ;;  %v1089_v37 = vpack.c.bf16 %v1087_v32, %v1085_v35 }
 0x22b   : > { %v1090_v36 = vpack.c.bf16 %v1088_v34, %v1086_v33 }
 0x22d   : > { %1122 = vmatprep.subr.bf16.mxu1 %v1090_v36 }
 0x22e   : > { %1123 = vmatpush1.bf16.msra.mxu1 %v1089_v37 }
 0x231   : > { %1279 = vmatmul.mubr.msk.bf16.vlgmr.msra.gmra.mxu1 %vm549_vm4, %v1317_v38 }
 0x232   : > { %1150 = vmatprep.mubr.bf16.mxu1 %v1327_v1 }
 0x239   : > { %1280 = vmatmul.mubr.msk.bf16.gmra.mxu1 %vm549_vm4, %v1318_v39 }
 0x2f1   : > { %v1142_v40 = vpop.f32.mrf.mxu1 }
 0x2f2   : > { %v1161_v41 = vadd.f32 %v1142_v40, %v1384_v8 }
 0x2f3   : > { %v1144_v42 = vpop.f32.mrf.mxu1 }
 0x2f4   : > { %1169 = vst [vmem:[%s170_s5] sm:$0xff] %v1161_v41  ;;  %v1162_v43 = vadd.f32 %v1144_v42, %v1406_v21 }
 0x2f5   : > { %v1146_v44 = vpop.f32.mrf.mxu1 }
 0x2f6   : > { %1170 = vst [vmem:[%s170_s5 + $0x8] sm:$0xff] %v1162_v43  ;;  %v1163_v1 = vadd.f32 %v1146_v44, %v1396_v14 }
 0x2f7   : > { %v1148_v46 = vpop.f32.mrf.mxu1 }
 0x2f8   : > { %1171 = vst [vmem:[%s170_s5 + $0x10] sm:$0xff] %v1163_v1  ;;  %v1164_v45 = vadd.f32 %v1148_v46, %v1408_v22 }
 0x2f9   : > { %v1152_v48 = vpop.f32.mrf.mxu1 }
 0x2fa   : > { %1172 = vst [vmem:[%s170_s5 + $0x18] sm:$0xff] %v1164_v45  ;;  %v1165_v50 = vadd.f32 %v1152_v48, %v1380_v6 }
 0x2fb   : > { %v1154_v51 = vpop.f32.mrf.mxu1 }
 0x2fc   : > { %1173 = vst [vmem:[%s170_s5 + $0x20] sm:$0xff] %v1165_v50  ;;  %v1166_v8 = vadd.f32 %v1154_v51, %v1399_v16 }
 0x2fd   : > { %v1156_v49 = vpop.f32.mrf.mxu1 }
 0x2fe   : > { %1174 = vst [vmem:[%s170_s5 + $0x28] sm:$0xff] %v1166_v8  ;;  %v1167_v21 = vadd.f32 %v1156_v49, %v1382_v7 }
 0x2ff   : > { %v1158_v47 = vpop.f32.mrf.mxu1 }
 0x300   : > { %1175 = vst [vmem:[%s170_s5 + $0x30] sm:$0xff] %v1167_v21  ;;  %v1168_v14 = vadd.f32 %v1158_v47, %v1401_v17 }
 0x302   : > { %1176 = vst [vmem:[%s170_s5 + $0x38] sm:$0xff] %v1168_v14 }
 0x303 PF: > { %s13_s12 = sadd.s32 1, %s1325_s12  }
 0x304   : > { %p10_p4 = scmp.ge.s32.totalorder %s13_s12, 4  }
 0x306   :  { %12 = sbr.rel (!%p10_p4) target bundleno = 1 (0x1), region = 70 }

</bundles_post_ra>
